<compile_context>
chip_gen: v7x
topology: tpu7x:2x2x1
jax: 0.10.0
libtpu: 0.0.40
codegen_flags: <defaults>
</compile_context>

<pallas_src>
import functools

import numpy as np
import jax
import jax.numpy as jnp
from jax import lax
from jax.experimental import pallas as pl
from jax.experimental.pallas import tpu as pltpu

# ----- static feature-group definition (from feature_groups) -----
GROUPS = {
    "group_weekday": list(range(0, 7)),
    "group_time": list(range(7, 15)),
    "group_gender": list(range(15, 19)),
    "group_camp": [19, 20],
    "group_grade": list(range(21, 32)),
    "group_lane": list(range(32, 37)),
    "group_district": list(range(37, 41)),
    "group_area": list(range(41, 76)),
    "group_r": list(range(76, 85)),
}
GROUP_BOUNDS = tuple((g[0], g[-1] + 1) for g in GROUPS.values())  # (start, end) per group
NUM_FEATURES = 85
NUM_GROUPS = len(GROUP_BOUNDS)

# Strict-upper-triangular-within-group prefix matrix:
#   P[k, j] = 1  iff  k < j and k, j belong to the same group.
# For a 0/1 "matches group max" mask m, (m @ P)[:, j] counts earlier matches in j's
# group, so "first occurrence" == (m & (m @ P == 0)).  Replaces 9 XLU min-reductions
# with one cheap MXU matmul.
_PREFIX_NP = np.zeros((NUM_FEATURES, NUM_FEATURES), dtype=np.float32)
for _s, _e in GROUP_BOUNDS:
    for _k in range(_s, _e):
        _PREFIX_NP[_k, _k + 1:_e] = 1.0


def _round_up(n, m):
    return ((n + m - 1) // m) * m


def _disc_encoder_kernel(x_ref, p_ref, w_ref, o_ref):
    """x_ref: [TB, F], p_ref: [F, F] bf16, w_ref: [F, G*D], o_ref: [TB, G*D]."""
    x = x_ref[...]                                            # [TB, F]
    col = lax.broadcasted_iota(jnp.int32, x.shape, 1)         # lane index per column
    neg_inf = jnp.array(-jnp.inf, dtype=x.dtype)

    # Boolean mask of "equals the max of my group" (one XLU reduction per group).
    match = jnp.zeros(x.shape, dtype=jnp.bool_)
    for (s, e) in GROUP_BOUNDS:                               # static unroll, 9 groups
        in_g = (col >= s) & (col < e)
        xg = jnp.where(in_g, x, neg_inf)
        mx = jnp.max(xg, axis=1, keepdims=True)               # group-wise max
        match = match | (in_g & (xg == mx))

    # First-occurrence tie-break via MXU prefix-count (no second lane reduction).
    pre = jnp.dot(match.astype(p_ref.dtype), p_ref[...],
                  preferred_element_type=jnp.float32)          # earlier matches in group
    sel = (match & (pre == 0.0)).astype(w_ref.dtype)          # exactly one 1 per group/row

    # Single MXU matmul: gather-by-one-hot against the block-diagonal embedding table.
    o_ref[...] = jnp.dot(sel, w_ref[...],
                         preferred_element_type=jnp.float32).astype(o_ref.dtype)


@functools.partial(jax.jit, static_argnames=("out_shape", "block_b", "out_dtype"))
def disc_encoder_forward(x, w_big, out_shape="1d", block_b=1024, out_dtype=jnp.float32):
    """x: [B, 85] float features.  w_big: [85, G*D] block-diagonal packed embeddings."""
    B, F = x.shape
    assert F == NUM_FEATURES
    GD = w_big.shape[1]

    # Batch tile: multiple of 8 sublanes, capped by block_b; pad B up to a tile multiple.
    tb = min(block_b, _round_up(B, 8))
    b_pad = _round_up(B, tb)
    if b_pad != B:
        x = jnp.pad(x, ((0, b_pad - B), (0, 0)))

    prefix = jnp.asarray(_PREFIX_NP, dtype=jnp.bfloat16)      # 0/1 values: bf16 is exact

    x_bytes = jnp.dtype(x.dtype).itemsize
    w_bytes = jnp.dtype(w_big.dtype).itemsize
    o_bytes = jnp.dtype(out_dtype).itemsize
    cost = pl.CostEstimate(
        flops=2 * b_pad * F * (GD + F),
        transcendentals=0,
        bytes_accessed=(b_pad * F * x_bytes + b_pad * GD * o_bytes
                        + F * GD * w_bytes + F * F * 2),
    )

    out = pl.pallas_call(
        _disc_encoder_kernel,
        out_shape=jax.ShapeDtypeStruct((b_pad, GD), out_dtype),
        grid=(b_pad // tb,),
        in_specs=[
            pl.BlockSpec((tb, F), lambda i: (i, 0)),          # streamed batch tile
            pl.BlockSpec((F, F), lambda i: (0, 0)),           # resident prefix matrix
            pl.BlockSpec((F, GD), lambda i: (0, 0)),          # resident embedding table
        ],
        out_specs=pl.BlockSpec((tb, GD), lambda i: (i, 0)),
        compiler_params=pltpu.CompilerParams(
            dimension_semantics=("parallel",),                # 2 TCs on v7x split the batch
        ),
        cost_estimate=cost,
    )(x, prefix, w_big)

    out = out[:B]
    if out_shape == "1d":
        return out                                            # [B, G*D] == torch.cat(dim=1)
    return out.reshape(B, NUM_GROUPS, GD // NUM_GROUPS)       # [B, G, D] == torch.stack(dim=1)


def init_params(key, embed_dim):
    """Deterministic stand-in for nn.Embedding weights (N(0,1)), packed block-diagonally."""
    w_big = jnp.zeros((NUM_FEATURES, NUM_GROUPS * embed_dim), dtype=jnp.float32)
    tables = []
    for g, (s, e) in enumerate(GROUP_BOUNDS):
        key, sub = jax.random.split(key)
        tbl = jax.random.normal(sub, (e - s, embed_dim), dtype=jnp.float32)
        tables.append(tbl)
        w_big = w_big.at[s:e, g * embed_dim:(g + 1) * embed_dim].set(tbl)
    return w_big, tables


def reference_forward(x, tables, out_shape="1d"):
    """Pure-JAX reference mirroring the PyTorch forward (argmax tie-break = first)."""
    pieces = []
    for tbl, (s, e) in zip(tables, GROUP_BOUNDS):
        idx = jnp.argmax(x[:, s:e], axis=1)
        pieces.append(tbl[idx])
    if out_shape == "1d":
        return jnp.concatenate(pieces, axis=1)
    return jnp.stack(pieces, axis=1)


if __name__ == "__main__":
    EMBED_DIM = 16
    key = jax.random.PRNGKey(0)
    k_w, k_x, k_x2 = jax.random.split(key, 3)
    w_big, tables = init_params(k_w, EMBED_DIM)

    # --- small case (single block), including tie rows for first-occurrence semantics ---
    B = 8
    x = jax.random.uniform(k_x, (B, NUM_FEATURES), dtype=jnp.float32)
    x = x.at[0].set(0.0)            # all-zero row: per-group argmax -> first column
    x = x.at[1, 7:15].set(1.0)      # tied maxima inside group_time -> first occurrence
    out = jax.block_until_ready(disc_encoder_forward(x, w_big))
    ref = reference_forward(x, tables)
    assert out.shape == (B, NUM_GROUPS * EMBED_DIM), out.shape
    assert jnp.allclose(out, ref, atol=1e-5, rtol=1e-5), "1d mismatch vs reference"

    out2d = jax.block_until_ready(disc_encoder_forward(x, w_big, out_shape="2d"))
    ref2d = reference_forward(x, tables, out_shape="2d")
    assert jnp.allclose(out2d, ref2d, atol=1e-5, rtol=1e-5), "2d mismatch vs reference"

    # --- multi-block grid + batch-remainder padding path ---
    B2 = 100
    x2 = jax.random.uniform(k_x2, (B2, NUM_FEATURES), dtype=jnp.float32)
    out_big = jax.block_until_ready(disc_encoder_forward(x2, w_big, block_b=32))
    ref_big = reference_forward(x2, tables)
    assert jnp.allclose(out_big, ref_big, atol=1e-5, rtol=1e-5), "tiled mismatch vs reference"

    # --- optional bf16 table / bf16 output fast path (halves HBM writeback) ---
    w_bf16 = w_big.astype(jnp.bfloat16)
    out_bf = jax.block_until_ready(
        disc_encoder_forward(x2, w_bf16, block_b=32, out_dtype=jnp.bfloat16))
    tables_bf = [t.astype(jnp.bfloat16).astype(jnp.float32) for t in tables]
    ref_bf = reference_forward(x2, tables_bf)
    assert jnp.allclose(out_bf.astype(jnp.float32), ref_bf, atol=1e-6, rtol=1e-6), \
        "bf16 path mismatch vs bf16-rounded reference"

    print("KERNEL_OK")
</pallas_src>

<mosaic_0001>
module attributes {stable_mosaic.version = 11 : i64} {
  func.func @_disc_encoder_kernel(%arg0: i32, %arg1: memref<8x85xf32, #tpu.memory_space<vmem>>, %arg2: memref<85x85xbf16, #tpu.memory_space<vmem>>, %arg3: memref<85x144xf32, #tpu.memory_space<vmem>>, %arg4: memref<8x144xf32, #tpu.memory_space<vmem>>) attributes {dimension_semantics = [#tpu.dimension_semantics<parallel>], iteration_bounds = array<i64: 1>, scalar_prefetch = 0 : i64, scratch_operands = 0 : i64, tpu.core_type = #tpu.core_type<tc>, window_params = [{transform_indices = @transform_0, window_bounds = array<i64: 8, 85>}, {pipeline_mode = #tpu.pipeline_mode<synchronous>, transform_indices = @transform_1, window_bounds = array<i64: 85, 85>}, {pipeline_mode = #tpu.pipeline_mode<synchronous>, transform_indices = @transform_2, window_bounds = array<i64: 85, 144>}, {transform_indices = @transform_3, window_bounds = array<i64: 8, 144>}]} {
    %c0 = arith.constant 0 : index
    %c0_0 = arith.constant 0 : index
    %0 = vector.load %arg1[%c0, %c0_0] : memref<8x85xf32, #tpu.memory_space<vmem>>, vector<8x85xf32>
    %1 = tpu.iota {dimensions = array<i32: 1>} : vector<8x85xi32>
    %false = arith.constant false
    %2 = vector.broadcast %false : i1 to vector<8x85xi1>
    %c0_i32 = arith.constant 0 : i32
    %3 = vector.broadcast %c0_i32 : i32 to vector<8x85xi32>
    %4 = arith.cmpi sge, %1, %3 : vector<8x85xi32>
    %c7_i32 = arith.constant 7 : i32
    %5 = vector.broadcast %c7_i32 : i32 to vector<8x85xi32>
    %6 = arith.cmpi slt, %1, %5 : vector<8x85xi32>
    %7 = arith.andi %4, %6 : vector<8x85xi1>
    %cst = arith.constant 0xFF800000 : f32
    %8 = vector.broadcast %cst : f32 to vector<8x85xf32>
    %9 = arith.select %7, %0, %8 : vector<8x85xi1>, vector<8x85xf32>
    %cst_1 = arith.constant dense<0xFF800000> : vector<8xf32>
    %10 = vector.multi_reduction <maximumf>, %9, %cst_1 [1] : vector<8x85xf32> to vector<8xf32>
    %11 = vector.shape_cast %10 : vector<8xf32> to vector<8x1xf32>
    %12 = vector.broadcast %11 : vector<8x1xf32> to vector<8x85xf32>
    %13 = arith.cmpf oeq, %9, %12 : vector<8x85xf32>
    %14 = arith.andi %7, %13 : vector<8x85xi1>
    %15 = arith.ori %2, %14 : vector<8x85xi1>
    %c7_i32_2 = arith.constant 7 : i32
    %16 = vector.broadcast %c7_i32_2 : i32 to vector<8x85xi32>
    %17 = arith.cmpi sge, %1, %16 : vector<8x85xi32>
    %c15_i32 = arith.constant 15 : i32
    %18 = vector.broadcast %c15_i32 : i32 to vector<8x85xi32>
    %19 = arith.cmpi slt, %1, %18 : vector<8x85xi32>
    %20 = arith.andi %17, %19 : vector<8x85xi1>
    %cst_3 = arith.constant 0xFF800000 : f32
    %21 = vector.broadcast %cst_3 : f32 to vector<8x85xf32>
    %22 = arith.select %20, %0, %21 : vector<8x85xi1>, vector<8x85xf32>
    %cst_4 = arith.constant dense<0xFF800000> : vector<8xf32>
    %23 = vector.multi_reduction <maximumf>, %22, %cst_4 [1] : vector<8x85xf32> to vector<8xf32>
    %24 = vector.shape_cast %23 : vector<8xf32> to vector<8x1xf32>
    %25 = vector.broadcast %24 : vector<8x1xf32> to vector<8x85xf32>
    %26 = arith.cmpf oeq, %22, %25 : vector<8x85xf32>
    %27 = arith.andi %20, %26 : vector<8x85xi1>
    %28 = arith.ori %15, %27 : vector<8x85xi1>
    %c15_i32_5 = arith.constant 15 : i32
    %29 = vector.broadcast %c15_i32_5 : i32 to vector<8x85xi32>
    %30 = arith.cmpi sge, %1, %29 : vector<8x85xi32>
    %c19_i32 = arith.constant 19 : i32
    %31 = vector.broadcast %c19_i32 : i32 to vector<8x85xi32>
    %32 = arith.cmpi slt, %1, %31 : vector<8x85xi32>
    %33 = arith.andi %30, %32 : vector<8x85xi1>
    %cst_6 = arith.constant 0xFF800000 : f32
    %34 = vector.broadcast %cst_6 : f32 to vector<8x85xf32>
    %35 = arith.select %33, %0, %34 : vector<8x85xi1>, vector<8x85xf32>
    %cst_7 = arith.constant dense<0xFF800000> : vector<8xf32>
    %36 = vector.multi_reduction <maximumf>, %35, %cst_7 [1] : vector<8x85xf32> to vector<8xf32>
    %37 = vector.shape_cast %36 : vector<8xf32> to vector<8x1xf32>
    %38 = vector.broadcast %37 : vector<8x1xf32> to vector<8x85xf32>
    %39 = arith.cmpf oeq, %35, %38 : vector<8x85xf32>
    %40 = arith.andi %33, %39 : vector<8x85xi1>
    %41 = arith.ori %28, %40 : vector<8x85xi1>
    %c19_i32_8 = arith.constant 19 : i32
    %42 = vector.broadcast %c19_i32_8 : i32 to vector<8x85xi32>
    %43 = arith.cmpi sge, %1, %42 : vector<8x85xi32>
    %c21_i32 = arith.constant 21 : i32
    %44 = vector.broadcast %c21_i32 : i32 to vector<8x85xi32>
    %45 = arith.cmpi slt, %1, %44 : vector<8x85xi32>
    %46 = arith.andi %43, %45 : vector<8x85xi1>
    %cst_9 = arith.constant 0xFF800000 : f32
    %47 = vector.broadcast %cst_9 : f32 to vector<8x85xf32>
    %48 = arith.select %46, %0, %47 : vector<8x85xi1>, vector<8x85xf32>
    %cst_10 = arith.constant dense<0xFF800000> : vector<8xf32>
    %49 = vector.multi_reduction <maximumf>, %48, %cst_10 [1] : vector<8x85xf32> to vector<8xf32>
    %50 = vector.shape_cast %49 : vector<8xf32> to vector<8x1xf32>
    %51 = vector.broadcast %50 : vector<8x1xf32> to vector<8x85xf32>
    %52 = arith.cmpf oeq, %48, %51 : vector<8x85xf32>
    %53 = arith.andi %46, %52 : vector<8x85xi1>
    %54 = arith.ori %41, %53 : vector<8x85xi1>
    %c21_i32_11 = arith.constant 21 : i32
    %55 = vector.broadcast %c21_i32_11 : i32 to vector<8x85xi32>
    %56 = arith.cmpi sge, %1, %55 : vector<8x85xi32>
    %c32_i32 = arith.constant 32 : i32
    %57 = vector.broadcast %c32_i32 : i32 to vector<8x85xi32>
    %58 = arith.cmpi slt, %1, %57 : vector<8x85xi32>
    %59 = arith.andi %56, %58 : vector<8x85xi1>
    %cst_12 = arith.constant 0xFF800000 : f32
    %60 = vector.broadcast %cst_12 : f32 to vector<8x85xf32>
    %61 = arith.select %59, %0, %60 : vector<8x85xi1>, vector<8x85xf32>
    %cst_13 = arith.constant dense<0xFF800000> : vector<8xf32>
    %62 = vector.multi_reduction <maximumf>, %61, %cst_13 [1] : vector<8x85xf32> to vector<8xf32>
    %63 = vector.shape_cast %62 : vector<8xf32> to vector<8x1xf32>
    %64 = vector.broadcast %63 : vector<8x1xf32> to vector<8x85xf32>
    %65 = arith.cmpf oeq, %61, %64 : vector<8x85xf32>
    %66 = arith.andi %59, %65 : vector<8x85xi1>
    %67 = arith.ori %54, %66 : vector<8x85xi1>
    %c32_i32_14 = arith.constant 32 : i32
    %68 = vector.broadcast %c32_i32_14 : i32 to vector<8x85xi32>
    %69 = arith.cmpi sge, %1, %68 : vector<8x85xi32>
    %c37_i32 = arith.constant 37 : i32
    %70 = vector.broadcast %c37_i32 : i32 to vector<8x85xi32>
    %71 = arith.cmpi slt, %1, %70 : vector<8x85xi32>
    %72 = arith.andi %69, %71 : vector<8x85xi1>
    %cst_15 = arith.constant 0xFF800000 : f32
    %73 = vector.broadcast %cst_15 : f32 to vector<8x85xf32>
    %74 = arith.select %72, %0, %73 : vector<8x85xi1>, vector<8x85xf32>
    %cst_16 = arith.constant dense<0xFF800000> : vector<8xf32>
    %75 = vector.multi_reduction <maximumf>, %74, %cst_16 [1] : vector<8x85xf32> to vector<8xf32>
    %76 = vector.shape_cast %75 : vector<8xf32> to vector<8x1xf32>
    %77 = vector.broadcast %76 : vector<8x1xf32> to vector<8x85xf32>
    %78 = arith.cmpf oeq, %74, %77 : vector<8x85xf32>
    %79 = arith.andi %72, %78 : vector<8x85xi1>
    %80 = arith.ori %67, %79 : vector<8x85xi1>
    %c37_i32_17 = arith.constant 37 : i32
    %81 = vector.broadcast %c37_i32_17 : i32 to vector<8x85xi32>
    %82 = arith.cmpi sge, %1, %81 : vector<8x85xi32>
    %c41_i32 = arith.constant 41 : i32
    %83 = vector.broadcast %c41_i32 : i32 to vector<8x85xi32>
    %84 = arith.cmpi slt, %1, %83 : vector<8x85xi32>
    %85 = arith.andi %82, %84 : vector<8x85xi1>
    %cst_18 = arith.constant 0xFF800000 : f32
    %86 = vector.broadcast %cst_18 : f32 to vector<8x85xf32>
    %87 = arith.select %85, %0, %86 : vector<8x85xi1>, vector<8x85xf32>
    %cst_19 = arith.constant dense<0xFF800000> : vector<8xf32>
    %88 = vector.multi_reduction <maximumf>, %87, %cst_19 [1] : vector<8x85xf32> to vector<8xf32>
    %89 = vector.shape_cast %88 : vector<8xf32> to vector<8x1xf32>
    %90 = vector.broadcast %89 : vector<8x1xf32> to vector<8x85xf32>
    %91 = arith.cmpf oeq, %87, %90 : vector<8x85xf32>
    %92 = arith.andi %85, %91 : vector<8x85xi1>
    %93 = arith.ori %80, %92 : vector<8x85xi1>
    %c41_i32_20 = arith.constant 41 : i32
    %94 = vector.broadcast %c41_i32_20 : i32 to vector<8x85xi32>
    %95 = arith.cmpi sge, %1, %94 : vector<8x85xi32>
    %c76_i32 = arith.constant 76 : i32
    %96 = vector.broadcast %c76_i32 : i32 to vector<8x85xi32>
    %97 = arith.cmpi slt, %1, %96 : vector<8x85xi32>
    %98 = arith.andi %95, %97 : vector<8x85xi1>
    %cst_21 = arith.constant 0xFF800000 : f32
    %99 = vector.broadcast %cst_21 : f32 to vector<8x85xf32>
    %100 = arith.select %98, %0, %99 : vector<8x85xi1>, vector<8x85xf32>
    %cst_22 = arith.constant dense<0xFF800000> : vector<8xf32>
    %101 = vector.multi_reduction <maximumf>, %100, %cst_22 [1] : vector<8x85xf32> to vector<8xf32>
    %102 = vector.shape_cast %101 : vector<8xf32> to vector<8x1xf32>
    %103 = vector.broadcast %102 : vector<8x1xf32> to vector<8x85xf32>
    %104 = arith.cmpf oeq, %100, %103 : vector<8x85xf32>
    %105 = arith.andi %98, %104 : vector<8x85xi1>
    %106 = arith.ori %93, %105 : vector<8x85xi1>
    %c76_i32_23 = arith.constant 76 : i32
    %107 = vector.broadcast %c76_i32_23 : i32 to vector<8x85xi32>
    %108 = arith.cmpi sge, %1, %107 : vector<8x85xi32>
    %c85_i32 = arith.constant 85 : i32
    %109 = vector.broadcast %c85_i32 : i32 to vector<8x85xi32>
    %110 = arith.cmpi slt, %1, %109 : vector<8x85xi32>
    %111 = arith.andi %108, %110 : vector<8x85xi1>
    %cst_24 = arith.constant 0xFF800000 : f32
    %112 = vector.broadcast %cst_24 : f32 to vector<8x85xf32>
    %113 = arith.select %111, %0, %112 : vector<8x85xi1>, vector<8x85xf32>
    %cst_25 = arith.constant dense<0xFF800000> : vector<8xf32>
    %114 = vector.multi_reduction <maximumf>, %113, %cst_25 [1] : vector<8x85xf32> to vector<8xf32>
    %115 = vector.shape_cast %114 : vector<8xf32> to vector<8x1xf32>
    %116 = vector.broadcast %115 : vector<8x1xf32> to vector<8x85xf32>
    %117 = arith.cmpf oeq, %113, %116 : vector<8x85xf32>
    %118 = arith.andi %111, %117 : vector<8x85xi1>
    %119 = arith.ori %106, %118 : vector<8x85xi1>
    %120 = arith.extui %119 : vector<8x85xi1> to vector<8x85xi32>
    %121 = arith.sitofp %120 : vector<8x85xi32> to vector<8x85xf32>
    %122 = arith.truncf %121 : vector<8x85xf32> to vector<8x85xbf16>
    %c0_26 = arith.constant 0 : index
    %c0_27 = arith.constant 0 : index
    %123 = vector.load %arg2[%c0_26, %c0_27] : memref<85x85xbf16, #tpu.memory_space<vmem>>, vector<85x85xbf16>
    %cst_28 = arith.constant dense<0.000000e+00> : vector<8x85xf32>
    %124 = tpu.matmul %122, %123, %cst_28 {dimension_numbers = #tpu.dot_dimension_numbers<[1], [0], [0], [1], [0, 0, 1, 1], [], []>} : vector<8x85xbf16>, vector<85x85xbf16>, vector<8x85xf32> -> vector<8x85xf32>
    %cst_29 = arith.constant 0.000000e+00 : f32
    %125 = vector.broadcast %cst_29 : f32 to vector<8x85xf32>
    %126 = arith.cmpf oeq, %124, %125 : vector<8x85xf32>
    %127 = arith.andi %119, %126 : vector<8x85xi1>
    %128 = arith.extui %127 : vector<8x85xi1> to vector<8x85xi32>
    %129 = arith.sitofp %128 : vector<8x85xi32> to vector<8x85xf32>
    %c0_30 = arith.constant 0 : index
    %c0_31 = arith.constant 0 : index
    %130 = vector.load %arg3[%c0_30, %c0_31] : memref<85x144xf32, #tpu.memory_space<vmem>>, vector<85x144xf32>
    %cst_32 = arith.constant dense<0.000000e+00> : vector<8x144xf32>
    %131 = tpu.matmul %129, %130, %cst_32 {dimension_numbers = #tpu.dot_dimension_numbers<[1], [0], [0], [1], [0, 0, 1, 1], [], []>} : vector<8x85xf32>, vector<85x144xf32>, vector<8x144xf32> -> vector<8x144xf32>
    %c0_33 = arith.constant 0 : index
    %c0_34 = arith.constant 0 : index
    %132 = vector.load %arg4[%c0_33, %c0_34] : memref<8x144xf32, #tpu.memory_space<vmem>>, vector<8x144xf32>
    tpu.vector_store %arg4[%c0_33, %c0_34], %131 {strides = array<i32>} : memref<8x144xf32, #tpu.memory_space<vmem>>, vector<8x144xf32>,
    return
  }
  func.func @transform_0(%arg0: i32) -> (i32, i32) {
    %c0_i32 = arith.constant 0 : i32
    %c0_i32_0 = arith.constant 0 : i32
    return %arg0, %c0_i32 : i32, i32
  }
  func.func @transform_1(%arg0: i32) -> (i32, i32) {
    %c0_i32 = arith.constant 0 : i32
    %c0_i32_0 = arith.constant 0 : i32
    %c0_i32_1 = arith.constant 0 : i32
    return %c0_i32, %c0_i32_0 : i32, i32
  }
  func.func @transform_2(%arg0: i32) -> (i32, i32) {
    %c0_i32 = arith.constant 0 : i32
    %c0_i32_0 = arith.constant 0 : i32
    %c0_i32_1 = arith.constant 0 : i32
    return %c0_i32, %c0_i32_0 : i32, i32
  }
  func.func @transform_3(%arg0: i32) -> (i32, i32) {
    %c0_i32 = arith.constant 0 : i32
    %c0_i32_0 = arith.constant 0 : i32
    return %arg0, %c0_i32 : i32, i32
  }
}

</mosaic_0001>

<bundles_post_ra>
// kernel: disc_encoder_forward.1
= control target key start
LH: loop header
LB: loop body
LE: loop exit
PB: predicated region body
PF: predicated region fallthrough
CT: control target
= control target key end

     0   :  { %v17_v1 = vlaneseq  ;;  %v419_v3 = vmov 0.0   ;;  %vm690_vm0 = vcmask 695296   ;;  %v703_v18 = vmov 0  ;;  %s686_s0 = inlined_call_operand.vmem [shape: f32[8,85], index: 0, kind: input, shape index: {}]   ;;  %s687_s1 = inlined_call_operand.vmem [shape: bf16[85,85], index: 1, kind: input, shape index: {}]   ;;  %s688_s2 = inlined_call_operand.vmem [shape: f32[85,144], index: 2, kind: input, shape index: {}]   ;;  %s689_s3 = inlined_call_operand.hbm [shape: f32[8,144], index: 3, kind: output, shape index: {}]  }
   0x1   :  { %v16_v0 = vld [vmem:[%s686_s0] sm:$0xff]  ;;  %349 = vmatprep.subr.bf16.mxu0 %v419_v3  ;;  %306 = vmatprep.mubr.f32.mxu1 %v419_v3  ;;  %v705_v20 = vmov 0  ;;  %v707_v21 = vmov 0 }
   0x2   :  { %v389_v2 = vld [vmem:[%s687_s1] sm:$0xff]   ;;  %v451_v4 = vand.u32 127, %v17_v1 }
   0x3   :  { %350 = vmatpush3.bf16.msra.mxu0 %v389_v2 }
   0x4   :  { %351 = vmatprep.subr.bf16.mxu0 %v419_v3  ;;  %vm20_vm1 = vcmp.lt.s32.totalorder %v451_v4, 7  ;;  %vm39_vm2 = vcmp.ge.s32.totalorder %v451_v4, 15  ;;  %vm40_vm3 = vcmp.lt.s32.totalorder %v451_v4, 19  ;;  %vm29_vm4 = vcmp.ge.s32.totalorder %v451_v4, 7 }
   0x5   :  { %v460_v5 = vsel %vm20_vm1, %v16_v0, -inf  ;;  %vm462_vm5 = vmand %vm39_vm2, %vm40_vm3  ;;  %vm30_vm6 = vcmp.lt.s32.totalorder %v451_v4, 15  ;;  %vm49_vm7 = vcmp.ge.s32.totalorder %v451_v4, 19  ;;  %vm50_vm8 = vcmp.lt.s32.totalorder %v451_v4, 21 }
   0x6   :  { %v24_v7 = vsel %vm690_vm0, %v460_v5, -inf  ;;  %v473_v8 = vsel %vm462_vm5, %v16_v0, -inf  ;;  %vm475_vm9 = vmand %vm29_vm4, %vm30_vm6  ;;  %vm59_vm10 = vcmp.ge.s32.totalorder %v451_v4, 21  ;;  %vm60_vm11 = vcmp.lt.s32.totalorder %v451_v4, 32 }
   0x7   :  { %25 = vmax.xlane.f32.xlu0 %v24_v7  ;;  %v43_v10 = vsel %vm690_vm0, %v473_v8, -inf  ;;  %v485_v11 = vsel %vm475_vm9, %v16_v0, -inf  ;;  %vm487_vm12 = vmand %vm49_vm7, %vm50_vm8  ;;  %vm69_vm13 = vcmp.ge.s32.totalorder %v451_v4, 32  ;;  %vm70_vm14 = vcmp.lt.s32.totalorder %v451_v4, 37 }
   0x8   :  { %44 = vmax.xlane.f32.xlu1 %v43_v10  ;;  %v33_v13 = vsel %vm690_vm0, %v485_v11, -inf  ;;  %v497_v14 = vsel %vm487_vm12, %v16_v0, -inf  ;;  %vm499_vm15 = vmand %vm59_vm10, %vm60_vm11  ;;  %vm79_vm2 = vcmp.ge.s32.totalorder %v451_v4, 37  ;;  %vm80_vm3 = vcmp.lt.s32.totalorder %v451_v4, 41 }
   0x9   :  { %v53_v16 = vsel %vm690_vm0, %v497_v14, -inf  ;;  %v509_v17 = vsel %vm499_vm15, %v16_v0, -inf  ;;  %vm511_vm4 = vmand %vm69_vm13, %vm70_vm14  ;;  %vm89_vm6 = vcmp.ge.s32.totalorder %v451_v4, 41  ;;  %vm90_vm7 = vcmp.lt.s32.totalorder %v451_v4, 76 }
   0xa   :  { %v704_v18 = vsel %vm511_vm4, 4294967295, %v703_v18  ;;  %v519_v19 = vsel %vm511_vm4, %v16_v0, -inf  ;;  %vm521_vm8 = vmand %vm79_vm2, %vm80_vm3  ;;  %vm99_vm11 = vcmp.ge.s32.totalorder %v451_v4, 76  ;;  %vm100_vm13 = vcmp.lt.s32.totalorder %v451_v4, 85 }
   0xb   :  { %v706_v20 = vsel %vm521_vm8, 4294967295, %v705_v20  ;;  %34 = vmax.xlane.f32.xlu0 %v33_v13  ;;  %vm525_vm10 = vmand %vm89_vm6, %vm90_vm7  ;;  %v63_v22 = vsel %vm690_vm0, %v509_v17, -inf  ;;  %v73_v23 = vsel %vm690_vm0, %v519_v19, -inf  ;;  %v537_v24 = vsel %vm521_vm8, %v16_v0, -inf }
   0xc   :  { %v708_v21 = vsel %vm525_vm10, 4294967295, %v707_v21  ;;  %54 = vmax.xlane.f32.xlu1 %v53_v16 }
   0xd   :  { %8 = vsyncpa [#allocation3], 0  ;;  %v541_v25 = vsel %vm525_vm10, %v16_v0, -inf  ;;  %v709_v26 = vmov 0  ;;  %v83_v27 = vsel %vm690_vm0, %v537_v24, -inf  ;;  %v390_v31 = vld [vmem:[%s687_s1 + $0x8] sm:$0xff]  }
   0xe   :  { %vm543_vm14 = vmand %vm99_vm11, %vm100_vm13  ;;  %v93_v28 = vsel %vm690_vm0, %v541_v25, -inf  ;;  %352 = vmatpush3.bf16.msra.mxu0 %v390_v31  ;;  %v391_v32 = vld [vmem:[%s687_s1 + $0x10] sm:$0xff]   ;;  %v392_v33 = vld [vmem:[%s687_s1 + $0x18] sm:$0xff]   ;;  %vm159_vm2 = vcmask 1041408   ;;  %vm160_vm3 = vcmask 1042432   ;;  %v420_v36 = vmov 65535  }
   0xf   :  { %v710_v26 = vsel %vm543_vm14, 4294967295, %v709_v26  ;;  %64 = vmax.xlane.f32.xlu0 %v63_v22  ;;  %v553_v29 = vsel %vm543_vm14, %v16_v0, -inf  ;;  %353 = vmatprep.subr.bf16.mxu0 %v419_v3  ;;  %v393_v34 = vld [vmem:[%s687_s1 + $0x20] sm:$0xff]   ;;  %v394_v35 = vld [vmem:[%s687_s1 + $0x28] ss:$0 sps:$4 sm:$0x77]  }
  0x10   :  { %74 = vmax.xlane.f32.xlu1 %v73_v23  ;;  %v103_v30 = vsel %vm690_vm0, %v553_v29, -inf  ;;  %v161_v37 = vsel %vm159_vm2, 4294967295, %v420_v36  ;;  %vm421_vm6 = vmmov 0   ;;  %v211_v40 = vld [vmem:[%s688_s2 + $0x8] sm:$0xff]  ;;  %v213_v41 = vld [vmem:[%s688_s2 + $0x18] sm:$0xff]  ;;  %v210_v42 = vld [vmem:[%s688_s2] sm:$0xff] }
  0x11   :  { %v162_v38 = vsel %vm160_vm3, %v161_v37, 0  ;;  %361 = vmatprep.mubr.msk.bf16.mxu0 %vm421_vm6, %v419_v3  ;;  %v365_v43 = vpack.c.bf16 %v213_v41, %v211_v40  ;;  %v212_v44 = vld [vmem:[%s688_s2 + $0x10] sm:$0xff]  ;;  %v215_v45 = vld [vmem:[%s688_s2 + $0x28] sm:$0xff]  ;;  %v217_v46 = vld [vmem:[%s688_s2 + $0x38] sm:$0xff]  ;;  %s422_s12 = smov [#allocation2]  }
  0x12   :  { %354 = vmatpush3.bf16.msra.mxu0 %v391_v32  ;;  %v164_v39 = vand.u32 %v394_v35, %v162_v38  ;;  %v367_v47 = vpack.c.bf16 %v212_v44, %v210_v42  ;;  %v369_v48 = vpack.c.bf16 %v217_v46, %v215_v45  ;;  %v214_v49 = vld [vmem:[%s688_s2 + $0x20] sm:$0xff]  ;;  %v216_v50 = vld [vmem:[%s688_s2 + $0x30] sm:$0xff]  ;;  %v219_v51 = vld [vmem:[%s688_s2 + $0x48] sm:$0xff]  ;;  %s322_s13 = sshll.u32 %s422_s12, 4  ;;  %s323_s13 = int_to_ptr.vmem [resolvable:$true] %s322_s13 }
  0x13   :  { %84 = vmax.xlane.f32.xlu0 %v83_v27  ;;  %355 = vmatprep.subr.bf16.mxu0 %v419_v3  ;;  %v221_v52 = vld [vmem:[%s688_s2 + $0x58] sm:$0xff]  ;;  %v371_v53 = vpack.c.bf16 %v216_v50, %v214_v49  ;;  %v218_v55 = vld [vmem:[%s688_s2 + $0x40] sm:$0xff]  ;;  %v220_v56 = vld [vmem:[%s688_s2 + $0x50] sm:$0xff]  ;;  %p400_p1 = scmp.lt.s32.totalorder %s323_s13, %s323_s13 }
  0x14   :  { %94 = vmax.xlane.f32.xlu1 %v93_v28  ;;  %366 = vmatprep.subr.bf16.mxu1 %v365_v43  ;;  %v373_v54 = vpack.c.bf16 %v221_v52, %v219_v51  ;;  %v223_v57 = vld [vmem:[%s688_s2 + $0x68] sm:$0xff]  ;;  %v225_v58 = vld [vmem:[%s688_s2 + $0x78] sm:$0xff]  ;;  %v375_v59 = vpack.c.bf16 %v220_v56, %v218_v55  ;;  %v222_v61 = vld [vmem:[%s688_s2 + $0x60] sm:$0xff] }
  0x15   :  { %368 = vmatpush1.bf16.msra.mxu1 %v367_v47  ;;  %v377_v60 = vpack.c.bf16 %v225_v58, %v223_v57  ;;  %v224_v62 = vld [vmem:[%s688_s2 + $0x70] sm:$0xff]  ;;  %v227_v63 = vld [vmem:[%s688_s2 + $0x88] sm:$0xff]  ;;  %v229_v0 = vld [vmem:[%s688_s2 + $0x98] sm:$0xff] }
  0x16   :  { %356 = vmatpush3.bf16.msra.mxu0 %v392_v33  ;;  %370 = vmatprep.subr.bf16.mxu1 %v369_v48  ;;  %v379_v1 = vpack.c.bf16 %v224_v62, %v222_v61  ;;  %v381_v2 = vpack.c.bf16 %v229_v0, %v227_v63  ;;  %v226_v7 = vld [vmem:[%s688_s2 + $0x80] sm:$0xff]  ;;  %v228_v10 = vld [vmem:[%s688_s2 + $0x90] sm:$0xff] }
  0x17   :  { %104 = vmax.xlane.f32.xlu0 %v103_v30  ;;  %357 = vmatprep.subr.bf16.mxu0 %v419_v3  ;;  %v383_v13 = vpack.c.bf16 %v228_v10, %v226_v7  ;;  %v230_v15 = vld [vmem:[%s688_s2 + $0xa0] sm:$0x1f] }
  0x19   :  { %372 = vmatpush1.bf16.msra.mxu1 %v371_v53 }
  0x1a   :  { %358 = vmatpush3.bf16.msra.mxu0 %v393_v34  ;;  %374 = vmatprep.subr.bf16.mxu1 %v373_v54 }
  0x1b   :  { %359 = vmatprep.subr.bf16.mxu0 %v419_v3 }
  0x1d   :  { %376 = vmatpush1.bf16.msra.mxu1 %v375_v59 }
  0x1e   :  { %360 = vmatpush3.bf16.msra.mxu0 %v164_v39  ;;  %378 = vmatprep.subr.bf16.mxu1 %v377_v60 }
  0x21   :  { %380 = vmatpush1.bf16.msra.mxu1 %v379_v1 }
  0x22   :  { %382 = vmatprep.subr.bf16.mxu1 %v381_v2 }
  0x25   :  { %384 = vmatpush1.bf16.msra.mxu1 %v383_v13 }
  0x94   :  { %v26_v16 = vpop.xlane.xlu0 %25 }
  0x95   :  { %vm27_vm7 = vcmp.eq.f32.partialorder %v460_v5, %v26_v16  ;;  %v45_v22 = vpop.xlane.xlu1 %44 }
  0x96   :  { %vm46_vm11 = vcmp.eq.f32.partialorder %v473_v8, %v45_v22  ;;  %vm28_vm13 = vmand %vm20_vm1, %vm27_vm7 }
  0x97   :  { %vm47_vm2 = vmand %vm462_vm5, %vm46_vm11 }
  0x98   :  { %v35_v23 = vpop.xlane.xlu0 %34 }
  0x99   :  { %vm36_vm3 = vcmp.eq.f32.partialorder %v485_v11, %v35_v23  ;;  %v55_v27 = vpop.xlane.xlu1 %54 }
  0x9a   :  { %vm37_vm6 = vmand %vm475_vm9, %vm36_vm3  ;;  %vm56_vm0 = vcmp.eq.f32.partialorder %v497_v14, %v55_v27  ;;  %vm711_vm9 = vnez %v704_v18  ;;  %v231_v14 = vld [vmem:[%s688_s2 + $0xa8] sm:$0x1f]  ;;  %s395_s2 = scalar_lea.vmem %s323_s13, 256 }
  0x9b   :  { %vm38_vm14 = vmor %vm28_vm13, %vm37_vm6  ;;  %p396_p0 = scmp.ne.s32.totalorder %s323_s13, %s395_s2  ;;  %p401_p2 = scmp.lt.s32.totalorder %s395_s2, %s395_s2 }
  0x9c   :  { %vm48_vm10 = vmor %vm38_vm14, %vm47_vm2  ;;  %v65_v5 = vpop.xlane.xlu0 %64 }
  0x9d   :  { %vm57_vm8 = vmand %vm487_vm12, %vm56_vm0  ;;  %vm66_vm1 = vcmp.eq.f32.partialorder %v509_v17, %v65_v5  ;;  %v75_v4 = vpop.xlane.xlu1 %74  ;;  %vm712_vm12 = vnez %v706_v20  ;;  %p402_p3 = por %p401_p2, %p400_p1 }
  0x9e   :  { %vm58_vm7 = vmor %vm48_vm10, %vm57_vm8  ;;  %vm76_vm5 = vcmp.eq.f32.partialorder %v519_v19, %v75_v4  ;;  %vm713_vm10 = vnez %v708_v21 }
  0x9f   :  { %vm67_vm11 = vmand %vm499_vm15, %vm66_vm1  ;;  %p403_p4 = pnand %p402_p3, %p396_p0 }
  0xa0   :  { %vm68_vm4 = vmor %vm58_vm7, %vm67_vm11  ;;  %v85_v6 = vpop.xlane.xlu0 %84  ;;  %vm714_vm7 = vnez %v710_v26 }
  0xa1   :  { %vm77_vm3 = vmand %vm711_vm9, %vm76_vm5  ;;  %vm86_vm14 = vcmp.eq.f32.partialorder %v537_v24, %v85_v6  ;;  %v95_v8 = vpop.xlane.xlu1 %94  ;;  %vm235_vm9 = vcmask 1044480  }
  0xa2   :  { %vm78_vm13 = vmor %vm68_vm4, %vm77_vm3  ;;  %vm96_vm0 = vcmp.eq.f32.partialorder %v541_v25, %v95_v8  ;;  %vm715_vm4 = vcmask 695296   ;;  %339 = vmatprep.subr.msk.mxu1 %vm235_vm9, %v231_v14 }
  0xa3   :  { %vm87_vm2 = vmand %vm712_vm12, %vm86_vm14  ;;  %340 = vmatpush1.msk.msra.mxu1 %vm235_vm9, %v230_v15 }
  0xa4   :  { %vm88_vm8 = vmor %vm78_vm13, %vm87_vm2  ;;  %v105_v9 = vpop.xlane.xlu0 %104 }
  0xa5   :  { %vm97_vm6 = vmand %vm713_vm10, %vm96_vm0  ;;  %vm106_vm15 = vcmp.eq.f32.partialorder %v553_v29, %v105_v9  ;;  %vm314_vm0 = vcmask 130048  }
  0xa6   :  { %vm98_vm1 = vmor %vm88_vm8, %vm97_vm6 }
  0xa7   :  { %vm107_vm5 = vmand %vm714_vm7, %vm106_vm15 }
  0xa8   :  { %vm108_vm11 = vmor %vm98_vm1, %vm107_vm5 }
  0xa9   :  { %v330_v11 = vsel %vm108_vm11, 1.0, %v419_v3  ;;  %vm716_vm13 = vmmov %vm715_vm4 }
  0xaa   :  { %v111_v12 = vpack.c.bf16 %v330_v11, %v330_v11 }
  0xac   :  { %362 = vmatmul.mubr.msk.bf16.vlgmr.msra.gmra.mrb[0].mxu0 %vm715_vm4, %v111_v12 }
 0x17f   :  { %v200_v17 = vpop.f32.mrb[0].mxu0 }
 0x180   :  { %vm206_vm3 = vcmp.eq.f32.partialorder %v200_v17, 0.0  ;;  %v363_v18 = vpop.f32.mrb[1].mxu0 }
 0x181   :  { %vm207_vm14 = vmand %vm108_vm11, %vm206_vm3  ;;  %v203_v19 = vpop.f32.mrb[2].mxu0 }
 0x182   :  { %v338_v20 = vsel %vm207_vm14, 1.0, %v419_v3  ;;  %v364_v21 = vpop.f32.mrb[3].mxu0 }
 0x183   :  { %341 = vmatmul.mubr.msk.f32.vlgmr.msra.gmra.mrb[0].mxu1 %vm716_vm13, %v338_v20 }
 0x256   :  { %v308_v24 = vpop.f32.mrb[0].mxu1 }
 0x257   :  { %313 = vst [vmem:[#allocation2] sm:$0xff] %v308_v24  ;;  %v310_v25 = vpop.f32.mrb[1].mxu1 }
 0x258   :  { %315 = vst.msk [vmem:[#allocation2 + $0x8] sm:$0xff] %vm314_vm0, %v310_v25 }
 0x259   :  { %406 = shalt.err (!%p403_p4)
}
 0x25a   :  { %s407_s0 = scalar_lea.hbm %s689_s3, 256 }
 0x25b   :  { %p408_p5 = scmp.ne.s32.totalorder %s689_s3, %s407_s0  ;;  %p411_p6 = scmp.lt.u32.totalorder %s407_s0, %s689_s3 }
 0x25d   :  { %p413_p7 = pnand %p411_p6, %p408_p5 }
 0x25f   :  { %416 = shalt.err (!%p413_p7)
}
 0x260   :  { %325 = dma.vmem_to_hbm [thread:$0]  %s323_s13, 256, %s689_s3, [#allocation3]  }
 0x261   :  { %417 = dma.done.wait [#allocation3], 256  }
 0x262   :  { %418 = vsyncadd [#allocation3], 4294967040 }
 0x263   :  { %329 = vsyncpa [#allocation3], 1 }

</bundles_post_ra>
